<compile_context>
chip_gen: v7x
topology: tpu7x:2x2x1
jax: 0.10.0
libtpu: 0.0.40
codegen_flags: <defaults>
</compile_context>

<pallas_src>
import numpy as np
import jax
import jax.numpy as jnp
from jax.experimental import pallas as pl
from jax.experimental.pallas import tpu as pltpu


# ----------------------------------------------------------------------------
# Pallas kernel
# ----------------------------------------------------------------------------
def _make_rgcn_kernel(*, tile_n, apply_relu, gaussian):
    """Fused RelGraphConv('bdd') layer (+ optional gaussian-sample epilogue).

    Grid = (node_tiles, num_rels, edge_chunks).  Refs (in order):
      lo_ref   : SMEM int32 (nt*R,)   first edge chunk per (node tile, relation)
      nd_ref   : SMEM int32 (nt*R,)   number of needed chunks (0 => skip compute)
      srcf_ref : VMEM bf16 (tile_e, D_in_p)   norm-scaled gathered source features
      dst_ref  : VMEM int32 (1, tile_e)       destination node ids (sentinel = N_pad)
      w_ref    : VMEM bf16 (R, D_in_p, D_out_p)  all relation weights (resident)
      feat_ref : VMEM bf16 (tile_n, D_in_p)   node features (self-loop term)
      loopw_ref: VMEM bf16 (D_in_p, D_out_p)
      bias_ref : VMEM f32  (1, D_out_p)
      [eps_ref]: VMEM f32  (tile_n, d_half_p) standard-normal noise (gaussian only)
      out_ref  : VMEM f32  (tile_n, D_out_p or d_half_p)
      rows_ref : VMEM i32  (tile_n, tile_e)   hoisted row-id table (scratch)
      [acc_ref]: VMEM f32  (tile_n, D_out_p)  accumulator (gaussian only; otherwise
                                              the resident out_ref is the acc)
    """

    def kernel(lo_ref, nd_ref, srcf_ref, dst_ref, w_ref, feat_ref, loopw_ref,
               bias_ref, *rest):
        del lo_ref  # only used by the index_maps
        if gaussian:
            eps_ref, out_ref, rows_ref, acc_ref = rest
        else:
            out_ref, rows_ref = rest
            acc_ref = out_ref            # accumulate directly into resident output

        i = pl.program_id(0)
        r = pl.program_id(1)
        k = pl.program_id(2)
        num_r = pl.num_programs(1)

        @pl.when((r == 0) & (k == 0))
        def _init():
            # Hoisted once per node tile (not per edge chunk): row ids for the
            # scatter match, plus zeroed accumulator.
            rows_ref[...] = (jax.lax.broadcasted_iota(jnp.int32, rows_ref.shape, 0)
                             + i * tile_n)
            acc_ref[...] = jnp.zeros_like(acc_ref)

        # Skip pure-padding / out-of-window edge chunks entirely (index_map clamps
        # to the previous block so skipped steps also cost no DMA).
        @pl.when(k < nd_ref[i * num_r + r])
        def _accumulate():
            # One relation-grouped MXU matmul per edge chunk (bf16 in, f32 acc).
            msg = jnp.dot(srcf_ref[...], w_ref[r],
                          preferred_element_type=jnp.float32)      # (tile_e, D_out_p)
            # Exact 0/1 one-hot scatter (norm already folded into srcf in f32);
            # compare/select stays f32 (no bf16 VALU on v5e), cast only at the MXU.
            scat = jnp.where(rows_ref[...] == dst_ref[...], 1.0, 0.0)
            acc_ref[...] += jnp.dot(scat.astype(jnp.bfloat16),
                                    msg.astype(jnp.bfloat16),
                                    preferred_element_type=jnp.float32)

        @pl.when((r == num_r - 1) & (k == pl.num_programs(2) - 1))
        def _finalize():
            # bias + self-loop matmul only once per node tile.
            h = (acc_ref[...] + bias_ref[...]
                 + jnp.dot(feat_ref[...], loopw_ref[...],
                           preferred_element_type=jnp.float32))
            if gaussian:
                # utils.gaussian_parameters + utils.sample_gaussian fused epilogue.
                d_half_p = acc_ref.shape[-1] // 2
                m = h[:, :d_half_p]
                raw = h[:, d_half_p:]
                v = (jnp.maximum(raw, 0.0)
                     + jnp.log(1.0 + jnp.exp(-jnp.abs(raw))) + 1e-8)  # stable softplus
                out_ref[...] = m + jnp.sqrt(v) * eps_ref[...]
            elif apply_relu:
                out_ref[...] = jnp.maximum(h, 0.0)
            else:
                out_ref[...] = h

    return kernel


# ----------------------------------------------------------------------------
# Host-side edge schedule (sort by (rel, dst), pad to chunks, build prefetch tables)
# ----------------------------------------------------------------------------
def build_edge_schedule(src_idx, dst_idx, rel_idx, norm, *, num_rels, num_nodes,
                        tile_n, tile_e):
    """num_nodes here is the *padded* node count (multiple of tile_n)."""
    assert num_nodes % tile_n == 0
    src = np.asarray(src_idx, np.int32)
    dst = np.asarray(dst_idx, np.int32)
    rel = np.asarray(rel_idx, np.int32)
    nrm = np.asarray(norm, np.float32).reshape(-1)
    nt = num_nodes // tile_n

    order = np.lexsort((dst, rel))            # primary key: relation, secondary: dst
    src, dst, rel, nrm = src[order], dst[order], rel[order], nrm[order]

    src_p, dst_p, nrm_p = [], [], []
    lo = np.zeros((nt, num_rels), np.int32)
    needed = np.zeros((nt, num_rels), np.int32)
    base = 0
    for r in range(num_rels):
        m = rel == r
        d_r, s_r, n_r = dst[m], src[m], nrm[m]
        e_r = int(d_r.shape[0])
        c_r = max(1, -(-e_r // tile_e))           # whole chunks per relation segment
        pad = c_r * tile_e - e_r
        src_p.append(np.concatenate([s_r, np.zeros(pad, np.int32)]))
        dst_p.append(np.concatenate([d_r, np.full(pad, num_nodes, np.int32)]))  # sentinel
        nrm_p.append(np.concatenate([n_r, np.zeros(pad, np.float32)]))
        for i in range(nt):
            a = np.searchsorted(d_r, i * tile_n, side="left")
            b = np.searchsorted(d_r, (i + 1) * tile_n, side="left")
            if b > a:
                lo[i, r] = base + a // tile_e
                needed[i, r] = (b - 1) // tile_e - a // tile_e + 1
            else:
                lo[i, r] = base                   # valid chunk; compute is skipped
                needed[i, r] = 0
        base += c_r
    k_chunks = max(1, int(needed.max()))

    return dict(
        src=jnp.asarray(np.concatenate(src_p).astype(np.int32)),
        dst=jnp.asarray(np.concatenate(dst_p).astype(np.int32)).reshape(1, -1),
        norm=jnp.asarray(np.concatenate(nrm_p).astype(np.float32)),
        lo=jnp.asarray(lo.reshape(-1)),
        needed=jnp.asarray(needed.reshape(-1)),
        k_chunks=k_chunks,
        n_tiles=nt,
        tile_e=tile_e,
    )


# ----------------------------------------------------------------------------
# Layer wrapper
# ----------------------------------------------------------------------------
def rgcn_layer(feat, sched, w_full, loop_w, bias, *, tile_n, tile_e,
               apply_relu=False, eps=None, vmem_limit_bytes=None):
    n_p, d_in_p = feat.shape
    num_rels, d_in_w, d_out_p = w_full.shape
    assert d_in_w == d_in_p
    nt = sched["n_tiles"]
    k_chunks = sched["k_chunks"]
    assert sched["tile_e"] == tile_e
    assert n_p == nt * tile_n

    gaussian = eps is not None
    out_cols = d_out_p // 2 if gaussian else d_out_p
    # Lane-dense outputs / operands (unmasked full-lane stores).
    assert d_in_p % 128 == 0 and d_out_p % 128 == 0 and out_cols % 128 == 0

    # Wrapper-side gather of the (norm-scaled, f32) source features, one bf16 cast.
    # TODO(synk): move this gather in-kernel (scalar-prefetched src ids + DMA) to
    #             cut the extra O(E x d_in) HBM round trip per layer.
    srcf = (feat[sched["src"]] * sched["norm"][:, None]).astype(jnp.bfloat16)
    w_bf = w_full.astype(jnp.bfloat16)
    loop_bf = loop_w.astype(jnp.bfloat16)
    feat_bf = feat.astype(jnp.bfloat16)

    R = num_rels

    def edge_map(i, r, k, lo, nd):                 # (tile_e, d_in_p) blocks of srcf
        idx = i * R + r
        kk = jnp.minimum(k, jnp.maximum(nd[idx] - 1, 0))   # clamp: skipped steps
        return (lo[idx] + kk, 0)                            # re-present same block

    def edge_map_row(i, r, k, lo, nd):             # (1, tile_e) blocks of dst ids
        idx = i * R + r
        kk = jnp.minimum(k, jnp.maximum(nd[idx] - 1, 0))
        return (0, lo[idx] + kk)

    in_specs = [
        pl.BlockSpec((tile_e, d_in_p), edge_map),                       # src feats
        pl.BlockSpec((1, tile_e), edge_map_row),                        # dst ids
        pl.BlockSpec((num_rels, d_in_p, d_out_p),
                     lambda i, r, k, lo, nd: (0, 0, 0)),                # resident W
        pl.BlockSpec((tile_n, d_in_p), lambda i, r, k, lo, nd: (i, 0)), # self-loop feat
        pl.BlockSpec((d_in_p, d_out_p), lambda i, r, k, lo, nd: (0, 0)),# loop weight
        pl.BlockSpec((1, d_out_p), lambda i, r, k, lo, nd: (0, 0)),     # bias
    ]
    args = [srcf, sched["dst"], w_bf, feat_bf, loop_bf, bias]
    if gaussian:
        in_specs.append(pl.BlockSpec((tile_n, out_cols),
                                     lambda i, r, k, lo, nd: (i, 0)))   # eps
        args.append(eps)

    scratch_shapes = [pltpu.VMEM((tile_n, tile_e), jnp.int32)]          # hoisted rows
    if gaussian:
        scratch_shapes.append(pltpu.VMEM((tile_n, d_out_p), jnp.float32))

    kernel = _make_rgcn_kernel(tile_n=tile_n, apply_relu=apply_relu,
                               gaussian=gaussian)

    grid_spec = pltpu.PrefetchScalarGridSpec(
        num_scalar_prefetch=2,
        grid=(nt, num_rels, k_chunks),
        in_specs=in_specs,
        out_specs=pl.BlockSpec((tile_n, out_cols),
                               lambda i, r, k, lo, nd: (i, 0)),
        scratch_shapes=scratch_shapes,
    )
    cp = dict(dimension_semantics=("parallel", "arbitrary", "arbitrary"))
    if vmem_limit_bytes is not None:      # raise for large tile_e on v5e/v6e; keep
        cp["vmem_limit_bytes"] = vmem_limit_bytes  # headroom vs v7x's 64 MiB VMEM
    return pl.pallas_call(
        kernel,
        out_shape=jax.ShapeDtypeStruct((n_p, out_cols), jnp.float32),
        grid_spec=grid_spec,
        compiler_params=pltpu.CompilerParams(**cp),
    )(sched["lo"], sched["needed"], *args)


# ----------------------------------------------------------------------------
# Parameter / layout helpers
# ----------------------------------------------------------------------------
def expand_bdd(w, d_in, d_out):
    """(R, B, si, so) block weights -> (R, d_in, d_out) block-diagonal matrices."""
    num_rels, num_bases, si, so = w.shape
    full = jnp.zeros((num_rels, d_in, d_out), jnp.float32)
    for b in range(num_bases):
        full = full.at[:, b * si:(b + 1) * si, b * so:(b + 1) * so].set(w[:, b])
    return full


def round_up(x, m):
    return -(-x // m) * m


def pad_axis(x, size, axis):
    pads = [(0, 0)] * x.ndim
    pads[axis] = (0, size - x.shape[axis])
    return jnp.pad(x, pads)


def split_pad_cols(x, d_half, d_half_p):
    """Last-dim layout [mu | sigma] (each d_half) -> [mu pad | sigma pad] (each d_half_p)."""
    mu = pad_axis(x[..., :d_half], d_half_p, -1)
    sg = pad_axis(x[..., d_half:], d_half_p, -1)
    return jnp.concatenate([mu, sg], axis=-1)


# ----------------------------------------------------------------------------
# Precision-matched plain-JAX reference (bf16 MXU operands, f32 accumulation)
# ----------------------------------------------------------------------------
def rgcn_ref(feat, src_idx, dst_idx, rel_idx, norm, w_full, loop_w, bias, relu):
    bf = jnp.bfloat16
    srcf = (feat[src_idx] * norm[:, None]).astype(bf)        # norm folded pre-cast
    msg = jnp.einsum('ed,edo->eo', srcf, w_full.astype(bf)[rel_idx],
                     preferred_element_type=jnp.float32)
    msg_q = msg.astype(bf).astype(jnp.float32)               # scatter operand quant
    agg = jnp.zeros((feat.shape[0], w_full.shape[-1]), jnp.float32
                    ).at[dst_idx].add(msg_q)
    h = agg + bias + jnp.dot(feat.astype(bf), loop_w.astype(bf),
                             preferred_element_type=jnp.float32)
    return jnp.maximum(h, 0.0) if relu else h


# ----------------------------------------------------------------------------
# Main
# ----------------------------------------------------------------------------
if __name__ == "__main__":
    num_nodes, h_dim, num_rels, num_bases, num_edges = 16, 32, 4, 4, 64
    # tile_n=128 fills the MXU rows even at this tiny graph (pad nodes to one tile);
    # at realistic N use tile_n=256 with nt>=2 (v7x megacore) and tile_e>=512.
    tile_n, tile_e = 128, 128
    si1, so1 = h_dim // num_bases, h_dim // num_bases            # layer1: 32 -> 32
    si2, so2 = h_dim // num_bases, (2 * h_dim) // num_bases      # layer2: 32 -> 64

    key = jax.random.PRNGKey(0)
    keys = jax.random.split(key, 12)

    # --- deterministic parameters (synthetic init, shapes per the module) ---
    embedding = jax.random.normal(keys[0], (num_nodes, h_dim), jnp.float32)
    w1 = jax.random.normal(keys[1], (num_rels, num_bases, si1, so1), jnp.float32) * 0.2
    loop_w1 = jax.random.normal(keys[2], (h_dim, h_dim), jnp.float32) * 0.2
    bias1 = jnp.zeros((1, h_dim), jnp.float32)
    w2 = jax.random.normal(keys[3], (num_rels, num_bases, si2, so2), jnp.float32) * 0.2
    loop_w2 = jax.random.normal(keys[4], (h_dim, 2 * h_dim), jnp.float32) * 0.2
    bias2 = jnp.zeros((1, 2 * h_dim), jnp.float32)
    w1_full = expand_bdd(w1, h_dim, h_dim)
    w2_full = expand_bdd(w2, h_dim, 2 * h_dim)

    # --- deterministic graph ---
    src_idx = jax.random.randint(keys[5], (num_edges,), 0, num_nodes)
    dst_idx = jax.random.randint(keys[6], (num_edges,), 0, num_nodes)
    rel_idx = jax.random.randint(keys[7], (num_edges,), 0, num_rels)
    in_deg = jnp.zeros((num_nodes,), jnp.float32).at[dst_idx].add(1.0)
    norm = 1.0 / jnp.maximum(in_deg[dst_idx], 1.0)               # (E,)

    # --- lane-dense padded layouts (zeros contribute nothing; outputs sliced) ---
    n_pad = round_up(num_nodes, tile_n)
    d_in_p = round_up(h_dim, 128)
    d_out1_p = round_up(h_dim, 128)
    d_half_p = round_up(h_dim, 128)

    sched = build_edge_schedule(src_idx, dst_idx, rel_idx, norm,
                                num_rels=num_rels, num_nodes=n_pad,
                                tile_n=tile_n, tile_e=tile_e)

    w1_p = pad_axis(pad_axis(w1_full, d_in_p, 1), d_out1_p, 2)
    loop1_p = pad_axis(pad_axis(loop_w1, d_in_p, 0), d_out1_p, 1)
    bias1_p = pad_axis(bias1, d_out1_p, 1)

    w2_p = pad_axis(split_pad_cols(w2_full, h_dim, d_half_p), d_in_p, 1)
    loop2_p = pad_axis(split_pad_cols(loop_w2, h_dim, d_half_p), d_in_p, 0)
    bias2_p = split_pad_cols(bias2, h_dim, d_half_p)

    feat0_p = pad_axis(pad_axis(embedding, d_in_p, 1), n_pad, 0)  # EmbeddingLayer(h)
    eps_p = jax.random.normal(keys[8], (n_pad, d_half_p), jnp.float32)

    # --- forward ---
    h1_p = rgcn_layer(feat0_p, sched, w1_p, loop1_p, bias1_p,
                      tile_n=tile_n, tile_e=tile_e,
                      apply_relu=True)                           # rconv_layer_1
    z_p = rgcn_layer(h1_p, sched, w2_p, loop2_p, bias2_p,
                     tile_n=tile_n, tile_e=tile_e,
                     apply_relu=False, eps=eps_p)                # rconv_layer_2 + sample
    z_p = jax.block_until_ready(z_p)

    h1 = h1_p[:num_nodes, :h_dim]
    z = z_p[:num_nodes, :h_dim]

    # --- correctness checks vs precision-matched references ---
    h1_ref = rgcn_ref(embedding, src_idx, dst_idx, rel_idx, norm,
                      w1_full, loop_w1, bias1, True)
    assert float(jnp.max(jnp.abs(h1 - h1_ref))) < 1e-2, "layer-1 mismatch"

    h2_ref = rgcn_ref(h1, src_idx, dst_idx, rel_idx, norm,       # layer-2 check uses
                      w2_full, loop_w2, bias2, False)            # the kernel's h1
    m_ref, raw_ref = h2_ref[:, :h_dim], h2_ref[:, h_dim:]
    v_ref = jax.nn.softplus(raw_ref) + 1e-8
    z_ref = m_ref + jnp.sqrt(v_ref) * eps_p[:num_nodes, :h_dim]
    assert z.shape == (num_nodes, h_dim)
    assert bool(jnp.all(jnp.isfinite(z)))
    assert float(jnp.max(jnp.abs(z - z_ref))) < 1e-2, "layer-2/sampler mismatch"

    print("KERNEL_OK")
</pallas_src>

<mosaic_0001>
module attributes {stable_mosaic.version = 11 : i64} {
  func.func @kernel(%arg0: i32, %arg1: i32, %arg2: i32, %arg3: memref<4xi32, #tpu.memory_space<smem>>, %arg4: memref<4xi32, #tpu.memory_space<smem>>, %arg5: memref<128x128xbf16, #tpu.memory_space<vmem>>, %arg6: memref<1x128xi32, #tpu.memory_space<vmem>>, %arg7: memref<4x128x128xbf16, #tpu.memory_space<vmem>>, %arg8: memref<128x128xbf16, #tpu.memory_space<vmem>>, %arg9: memref<128x128xbf16, #tpu.memory_space<vmem>>, %arg10: memref<1x128xf32, #tpu.memory_space<vmem>>, %arg11: memref<128x128xf32, #tpu.memory_space<vmem>>, %arg12: memref<128x128xi32, #tpu.memory_space<vmem>>) attributes {dimension_semantics = [#tpu.dimension_semantics<parallel>, #tpu.dimension_semantics<arbitrary>, #tpu.dimension_semantics<arbitrary>], iteration_bounds = array<i64: 1, 4, 1>, scalar_prefetch = 2 : i64, scratch_operands = 1 : i64, tpu.core_type = #tpu.core_type<tc>, window_params = [{transform_indices = @transform_0, window_bounds = array<i64: 128, 128>}, {transform_indices = @transform_1, window_bounds = array<i64: 1, 128>}, {pipeline_mode = #tpu.pipeline_mode<synchronous>, transform_indices = @transform_2, window_bounds = array<i64: 4, 128, 128>}, {transform_indices = @transform_3, window_bounds = array<i64: 128, 128>}, {pipeline_mode = #tpu.pipeline_mode<synchronous>, transform_indices = @transform_4, window_bounds = array<i64: 128, 128>}, {pipeline_mode = #tpu.pipeline_mode<synchronous>, transform_indices = @transform_5, window_bounds = array<i64: 1, 128>}, {transform_indices = @transform_6, window_bounds = array<i64: 128, 128>}]} {
    %c0_i32 = arith.constant 0 : i32
    %0 = arith.cmpi eq, %arg1, %c0_i32 : i32
    %c0_i32_0 = arith.constant 0 : i32
    %1 = arith.cmpi eq, %arg2, %c0_i32_0 : i32
    %2 = arith.andi %0, %1 : i1
    %3 = arith.extui %2 : i1 to i32
    %c0_i32_1 = arith.constant 0 : i32
    %4 = arith.cmpi ne, %3, %c0_i32_1 : i32
    scf.if %4 {
      %17 = tpu.iota {dimensions = array<i32: 0>} : vector<128x128xi32>
      %c128_i32 = arith.constant 128 : i32
      %18 = arith.muli %arg0, %c128_i32 : i32
      %19 = vector.broadcast %18 : i32 to vector<128x128xi32>
      %20 = arith.addi %17, %19 : vector<128x128xi32>
      %c0 = arith.constant 0 : index
      %c0_5 = arith.constant 0 : index
      %21 = vector.load %arg12[%c0, %c0_5] : memref<128x128xi32, #tpu.memory_space<vmem>>, vector<128x128xi32>
      tpu.vector_store %arg12[%c0, %c0_5], %20 {strides = array<i32>} : memref<128x128xi32, #tpu.memory_space<vmem>>, vector<128x128xi32>,
      %cst = arith.constant 0.000000e+00 : f32
      %22 = vector.broadcast %cst : f32 to vector<128x128xf32>
      %c0_6 = arith.constant 0 : index
      %c0_7 = arith.constant 0 : index
      %23 = vector.load %arg11[%c0_6, %c0_7] : memref<128x128xf32, #tpu.memory_space<vmem>>, vector<128x128xf32>
      tpu.vector_store %arg11[%c0_6, %c0_7], %22 {strides = array<i32>} : memref<128x128xf32, #tpu.memory_space<vmem>>, vector<128x128xf32>,
    } else {
    }
    %c4_i32 = arith.constant 4 : i32
    %5 = arith.muli %arg0, %c4_i32 : i32
    %6 = arith.addi %5, %arg1 : i32
    %7 = arith.index_cast %6 : i32 to index
    %8 = memref.load %arg4[%7] : memref<4xi32, #tpu.memory_space<smem>>
    %9 = arith.cmpi slt, %arg2, %8 : i32
    %10 = arith.extui %9 : i1 to i32
    %c0_i32_2 = arith.constant 0 : i32
    %11 = arith.cmpi ne, %10, %c0_i32_2 : i32
    scf.if %11 {
      %c0 = arith.constant 0 : index
      %c0_5 = arith.constant 0 : index
      %17 = vector.load %arg5[%c0, %c0_5] : memref<128x128xbf16, #tpu.memory_space<vmem>>, vector<128x128xbf16>
      %18 = arith.index_cast %arg1 : i32 to index
      %c0_6 = arith.constant 0 : index
      %c0_7 = arith.constant 0 : index
      %19 = vector.load %arg7[%18, %c0_6, %c0_7] : memref<4x128x128xbf16, #tpu.memory_space<vmem>>, vector<1x128x128xbf16>
      %20 = vector.shape_cast %19 : vector<1x128x128xbf16> to vector<128x128xbf16>
      %cst = arith.constant dense<0.000000e+00> : vector<128x128xf32>
      %21 = tpu.matmul %17, %20, %cst {dimension_numbers = #tpu.dot_dimension_numbers<[1], [0], [0], [1], [0, 0, 1, 1], [], []>} : vector<128x128xbf16>, vector<128x128xbf16>, vector<128x128xf32> -> vector<128x128xf32>
      %c0_8 = arith.constant 0 : index
      %c0_9 = arith.constant 0 : index
      %22 = vector.load %arg12[%c0_8, %c0_9] : memref<128x128xi32, #tpu.memory_space<vmem>>, vector<128x128xi32>
      %c0_10 = arith.constant 0 : index
      %c0_11 = arith.constant 0 : index
      %23 = vector.load %arg6[%c0_10, %c0_11] : memref<1x128xi32, #tpu.memory_space<vmem>>, vector<1x128xi32>
      %24 = vector.broadcast %23 : vector<1x128xi32> to vector<128x128xi32>
      %25 = arith.cmpi eq, %22, %24 : vector<128x128xi32>
      %cst_12 = arith.constant 1.000000e+00 : f32
      %cst_13 = arith.constant 0.000000e+00 : f32
      %26 = vector.broadcast %cst_12 : f32 to vector<128x128xf32>
      %27 = vector.broadcast %cst_13 : f32 to vector<128x128xf32>
      %28 = arith.select %25, %26, %27 : vector<128x128xi1>, vector<128x128xf32>
      %c0_14 = arith.constant 0 : index
      %c0_15 = arith.constant 0 : index
      %29 = vector.load %arg11[%c0_14, %c0_15] : memref<128x128xf32, #tpu.memory_space<vmem>>, vector<128x128xf32>
      %30 = arith.truncf %28 : vector<128x128xf32> to vector<128x128xbf16>
      %31 = arith.truncf %21 : vector<128x128xf32> to vector<128x128xbf16>
      %cst_16 = arith.constant dense<0.000000e+00> : vector<128x128xf32>
      %32 = tpu.matmul %30, %31, %cst_16 {dimension_numbers = #tpu.dot_dimension_numbers<[1], [0], [0], [1], [0, 0, 1, 1], [], []>} : vector<128x128xbf16>, vector<128x128xbf16>, vector<128x128xf32> -> vector<128x128xf32>
      %33 = arith.addf %29, %32 : vector<128x128xf32>
      %c0_17 = arith.constant 0 : index
      %c0_18 = arith.constant 0 : index
      %34 = vector.load %arg11[%c0_17, %c0_18] : memref<128x128xf32, #tpu.memory_space<vmem>>, vector<128x128xf32>
      tpu.vector_store %arg11[%c0_17, %c0_18], %33 {strides = array<i32>} : memref<128x128xf32, #tpu.memory_space<vmem>>, vector<128x128xf32>,
    } else {
    }
    %c3_i32 = arith.constant 3 : i32
    %12 = arith.cmpi eq, %arg1, %c3_i32 : i32
    %c0_i32_3 = arith.constant 0 : i32
    %13 = arith.cmpi eq, %arg2, %c0_i32_3 : i32
    %14 = arith.andi %12, %13 : i1
    %15 = arith.extui %14 : i1 to i32
    %c0_i32_4 = arith.constant 0 : i32
    %16 = arith.cmpi ne, %15, %c0_i32_4 : i32
    scf.if %16 {
      %c0 = arith.constant 0 : index
      %c0_5 = arith.constant 0 : index
      %17 = vector.load %arg11[%c0, %c0_5] : memref<128x128xf32, #tpu.memory_space<vmem>>, vector<128x128xf32>
      %c0_6 = arith.constant 0 : index
      %c0_7 = arith.constant 0 : index
      %18 = vector.load %arg10[%c0_6, %c0_7] : memref<1x128xf32, #tpu.memory_space<vmem>>, vector<1x128xf32>
      %19 = vector.broadcast %18 : vector<1x128xf32> to vector<128x128xf32>
      %20 = arith.addf %17, %19 : vector<128x128xf32>
      %c0_8 = arith.constant 0 : index
      %c0_9 = arith.constant 0 : index
      %21 = vector.load %arg8[%c0_8, %c0_9] : memref<128x128xbf16, #tpu.memory_space<vmem>>, vector<128x128xbf16>
      %c0_10 = arith.constant 0 : index
      %c0_11 = arith.constant 0 : index
      %22 = vector.load %arg9[%c0_10, %c0_11] : memref<128x128xbf16, #tpu.memory_space<vmem>>, vector<128x128xbf16>
      %cst = arith.constant dense<0.000000e+00> : vector<128x128xf32>
      %23 = tpu.matmul %21, %22, %cst {dimension_numbers = #tpu.dot_dimension_numbers<[1], [0], [0], [1], [0, 0, 1, 1], [], []>} : vector<128x128xbf16>, vector<128x128xbf16>, vector<128x128xf32> -> vector<128x128xf32>
      %24 = arith.addf %20, %23 : vector<128x128xf32>
      %cst_12 = arith.constant 0.000000e+00 : f32
      %25 = vector.broadcast %cst_12 : f32 to vector<128x128xf32>
      %26 = arith.maximumf %24, %25 : vector<128x128xf32>
      %c0_13 = arith.constant 0 : index
      %c0_14 = arith.constant 0 : index
      %27 = vector.load %arg11[%c0_13, %c0_14] : memref<128x128xf32, #tpu.memory_space<vmem>>, vector<128x128xf32>
      tpu.vector_store %arg11[%c0_13, %c0_14], %26 {strides = array<i32>} : memref<128x128xf32, #tpu.memory_space<vmem>>, vector<128x128xf32>,
    } else {
    }
    return
  }
  func.func @transform_0(%arg0: i32, %arg1: i32, %arg2: i32, %arg3: memref<4xi32, #tpu.memory_space<smem>>, %arg4: memref<4xi32, #tpu.memory_space<smem>>) -> (i32, i32) {
    %c4_i32 = arith.constant 4 : i32
    %0 = arith.muli %arg0, %c4_i32 : i32
    %1 = arith.addi %0, %arg1 : i32
    %2 = arith.index_cast %1 : i32 to index
    %3 = memref.load %arg4[%2] : memref<4xi32, #tpu.memory_space<smem>>
    %c1_i32 = arith.constant 1 : i32
    %4 = arith.subi %3, %c1_i32 : i32
    %c0_i32 = arith.constant 0 : i32
    %5 = arith.maxsi %4, %c0_i32 : i32
    %6 = arith.minsi %arg2, %5 : i32
    %7 = arith.index_cast %1 : i32 to index
    %8 = memref.load %arg3[%7] : memref<4xi32, #tpu.memory_space<smem>>
    %9 = arith.addi %8, %6 : i32
    %c0_i32_0 = arith.constant 0 : i32
    %c0_i32_1 = arith.constant 0 : i32
    return %9, %c0_i32_0 : i32, i32
  }
  func.func @transform_1(%arg0: i32, %arg1: i32, %arg2: i32, %arg3: memref<4xi32, #tpu.memory_space<smem>>, %arg4: memref<4xi32, #tpu.memory_space<smem>>) -> (i32, i32) {
    %c4_i32 = arith.constant 4 : i32
    %0 = arith.muli %arg0, %c4_i32 : i32
    %1 = arith.addi %0, %arg1 : i32
    %2 = arith.index_cast %1 : i32 to index
    %3 = memref.load %arg4[%2] : memref<4xi32, #tpu.memory_space<smem>>
    %c1_i32 = arith.constant 1 : i32
    %4 = arith.subi %3, %c1_i32 : i32
    %c0_i32 = arith.constant 0 : i32
    %5 = arith.maxsi %4, %c0_i32 : i32
    %6 = arith.minsi %arg2, %5 : i32
    %7 = arith.index_cast %1 : i32 to index
    %8 = memref.load %arg3[%7] : memref<4xi32, #tpu.memory_space<smem>>
    %9 = arith.addi %8, %6 : i32
    %c0_i32_0 = arith.constant 0 : i32
    %c0_i32_1 = arith.constant 0 : i32
    return %c0_i32_0, %9 : i32, i32
  }
  func.func @transform_2(%arg0: i32, %arg1: i32, %arg2: i32, %arg3: memref<4xi32, #tpu.memory_space<smem>>, %arg4: memref<4xi32, #tpu.memory_space<smem>>) -> (i32, i32, i32) {
    %c0_i32 = arith.constant 0 : i32
    %c0_i32_0 = arith.constant 0 : i32
    %c0_i32_1 = arith.constant 0 : i32
    %c0_i32_2 = arith.constant 0 : i32
    return %c0_i32, %c0_i32_0, %c0_i32_1 : i32, i32, i32
  }
  func.func @transform_3(%arg0: i32, %arg1: i32, %arg2: i32, %arg3: memref<4xi32, #tpu.memory_space<smem>>, %arg4: memref<4xi32, #tpu.memory_space<smem>>) -> (i32, i32) {
    %c0_i32 = arith.constant 0 : i32
    %c0_i32_0 = arith.constant 0 : i32
    return %arg0, %c0_i32 : i32, i32
  }
  func.func @transform_4(%arg0: i32, %arg1: i32, %arg2: i32, %arg3: memref<4xi32, #tpu.memory_space<smem>>, %arg4: memref<4xi32, #tpu.memory_space<smem>>) -> (i32, i32) {
    %c0_i32 = arith.constant 0 : i32
    %c0_i32_0 = arith.constant 0 : i32
    %c0_i32_1 = arith.constant 0 : i32
    return %c0_i32, %c0_i32_0 : i32, i32
  }
  func.func @transform_5(%arg0: i32, %arg1: i32, %arg2: i32, %arg3: memref<4xi32, #tpu.memory_space<smem>>, %arg4: memref<4xi32, #tpu.memory_space<smem>>) -> (i32, i32) {
    %c0_i32 = arith.constant 0 : i32
    %c0_i32_0 = arith.constant 0 : i32
    %c0_i32_1 = arith.constant 0 : i32
    return %c0_i32, %c0_i32_0 : i32, i32
  }
  func.func @transform_6(%arg0: i32, %arg1: i32, %arg2: i32, %arg3: memref<4xi32, #tpu.memory_space<smem>>, %arg4: memref<4xi32, #tpu.memory_space<smem>>) -> (i32, i32) {
    %c0_i32 = arith.constant 0 : i32
    %c0_i32_0 = arith.constant 0 : i32
    return %arg0, %c0_i32 : i32, i32
  }
}

</mosaic_0001>

<bundles_post_ra>
// kernel: tpu_custom_call.1
= control target key start
LH: loop header
LB: loop body
LE: loop exit
PB: predicated region body
PF: predicated region fallthrough
CT: control target
= control target key end

     0   :  { %s2496_s0 = inlined_call_operand.hbm [shape: s32[4], index: 0, kind: input, shape index: {}]   ;;  %s2497_s2 = inlined_call_operand.hbm [shape: bf16[512,128], index: 2, kind: input, shape index: {}]   ;;  %s2498_s3 = inlined_call_operand.vmem [shape: s32[1,512], index: 3, kind: input, shape index: {}]   ;;  %s2499_s4 = inlined_call_operand.hbm [shape: bf16[4,128,128], index: 4, kind: input, shape index: {}]   ;;  %s2500_s5 = inlined_call_operand.hbm [shape: bf16[128,128], index: 5, kind: input, shape index: {}]   ;;  %s2501_s6 = inlined_call_operand.hbm [shape: bf16[128,128], index: 6, kind: input, shape index: {}]   ;;  %s2502_s7 = inlined_call_operand.vmem [shape: f32[1,128], index: 7, kind: input, shape index: {}]   ;;  %s2503_s8 = inlined_call_operand.hbm [shape: f32[128,128], index: 8, kind: output, shape index: {}]   ;;  %s2504_s1 = inlined_call_operand.vmem [shape: s32[4], index: 1, kind: input, shape index: {}]  }
   0x1   :  { %2512 = sst [smem:[#allocation24_spill]] %s2499_s4  ;;  %s1839_s29 = scalar_lea.hbm %s2496_s0, 16 }
   0x2   :  { %2513 = sst [smem:[#allocation25_spill]] %s2500_s5  ;;  %p1840_p0 = scmp.ne.s32.totalorder %s2496_s0, %s1839_s29 }
   0x3   :  { %p1843_p1 = scmp.lt.u32.totalorder %s1839_s29, %s2496_s0 }
   0x5   :  { %p1845_p2 = pnand %p1843_p1, %p1840_p0 }
   0x7   :  { %1848 = shalt.err (!%p1845_p2)  }
   0x8   :  { %s2067_s12 = smov [#allocation4]   ;;  %s15_s17 = sshll.u32 %s2504_s1, 4  ;;  %s16_s17 = int_to_ptr.vmem [resolvable:$true] %s15_s17 }
   0x9   :  { %14 = dma.hbm_to_smem %s2496_s0, 16, %s2067_s12, [#allocation3] }
   0xa   :  { %s1849_s18 = scalar_lea.vmem %s16_s17, 16  ;;  %p1854_p4 = scmp.lt.s32.totalorder %s16_s17, %s16_s17 }
   0xb   :  { %p1850_p3 = scmp.ne.s32.totalorder %s16_s17, %s1849_s18  ;;  %p1855_p5 = scmp.lt.s32.totalorder %s1849_s18, %s1849_s18 }
   0xd   :  { %p1856_p6 = por %p1855_p5, %p1854_p4 }
   0xf   :  { %p1857_p7 = pnand %p1856_p6, %p1850_p3 }
  0x11   :  { %1860 = shalt.err (!%p1857_p7)  }
  0x12   :  { %s2068_s19 = smov [#allocation5]  }
  0x13   :  { %18 = dma.vmem_to_smem %s16_s17, 16, %s2068_s19, [#allocation3] }
  0x14   :  { %2025 = dma.done.wait [#allocation3], 32 }
  0x15   :  { %2026 = vsyncadd [#allocation3], 4294967264 }
  0x16   :  { %20 = sfence }
  0x17   :  { %21 = vsyncpa [#allocation7], 0 }
  0x18   :  { %23 = vsyncpa [#allocation7 + $0x1], 0 }
  0x19   :  { %24 = vsyncpa [#allocation10], 0 }
  0x1a   :  { %25 = vsyncpa [#allocation13], 0 }
  0x1b   :  { %26 = vsyncpa [#allocation8], 0  ;;  %s2140_s0 = smov 0   ;;  %s2142_s1 = smov 0  }
  0x1c   :  { %s2144_s20 = smov 0   ;;  %s2146_s21 = smov 0  }
  0x1d   :  { %s2148_s22 = smov 0   ;;  %s2150_s23 = smov 0  }
  0x1e LB: > { %s2507_s24 = sadd.s32 4294967295, %s2065_s23   ;;  %p91_p8 = scmp.ne.s32.totalorder %s2049_s1, %s2045_s0  ;;  %s2065_s23 = sphi %s2150_s23, %s32_s23   ;;  %s2061_s22 = sphi %s2148_s22, %s2534_s22   ;;  %s2057_s21 = sphi %s2146_s21, %s2533_s21   ;;  %s2053_s20 = sphi %s2144_s20, %s2532_s20   ;;  %s2049_s1 = sphi %s2142_s1, %s2531_s1   ;;  %s2045_s0 = sphi %s2140_s0, %s2530_s0  }
  0x1f   : > { %p2172_p9 = scmp.eq.s32.totalorder %s2507_s24, 0  ;;  %p1439_p10 = scmp.ge.s32.totalorder %s2065_s23, 1 }
  0x20   : > { %p263_p11 = scmp.lt.s32.totalorder %s2065_s23, 5  ;;  %s2069_s28 = smov [#allocation9]  }
  0x21   : > { %s2514_s25 = scalar_select %p2172_p9, 1, 0 }
  0x22   : > { %p2180_p12 = por %p2172_p9, %p91_p8  ;;  %p2184_p13 = pnand %p1439_p10, %p263_p11 }
  0x23   : > { %s275_s29 = sshll.u32 %s2069_s28, 4  ;;  %s2070_s9 = smov [#allocation11]   ;;  %s2188_s29 = int_to_ptr.vmem [resolvable:$true] %s275_s29 }
  0x24   : > { %s2515_s26 = scalar_select %p2180_p12, 1, 0 }
  0x25   : > { %s2516_s27 = scalar_select %p2184_p13, 1, 0 }
  0x26   : > { %p1720_p0 = pneg %p2184_p13  ;;  %s291_s10 = sshll.u32 %s2070_s9, 4  ;;  %s2198_s10 = int_to_ptr.vmem [resolvable:$true] %s291_s10 }
  0x27   : > { %s2071_s11 = smov [#allocation12]   ;;  %s2518_s4 = sld [smem:[#allocation24_spill]] }
  0x28   : > { %p2194_p1 = pnand %p1720_p0, %p2172_p9  ;;  %s2200_s12 = sshll.u32 %s2071_s11, 4  ;;  %s305_s12 = int_to_ptr.vmem [resolvable:$true] %s2200_s12 }
  0x2a   : > { %p2210_p3 = pneg %p2194_p1 }
  0x2d   : > { %s1861_s15 = scalar_lea.hbm %s2518_s4, 4096 }
  0x2e   : > { %p1862_p2 = scmp.ne.s32.totalorder %s2518_s4, %s1861_s15  ;;  %p1868_p6 = scmp.lt.u32.totalorder %s1861_s15, %s2518_s4 }
  0x30   : > { %p1864_p4 = pnand %p2210_p3, %p1862_p2 }
  0x32   : > { %p1865_p5 = pneg %p1864_p4 }
  0x34   : > { %p1870_p7 = pnand %p1868_p6, %p1865_p5 }
  0x36   : > { %1873 = shalt.err (!%p1870_p7)
}
  0x37   : > { %s1874_s28 = scalar_lea.vmem %s2188_s29, 4096  ;;  %p1882_p0 = scmp.lt.s32.totalorder %s2188_s29, %s2188_s29 }
  0x38   : > { %p1875_p8 = scmp.ne.s32.totalorder %s2188_s29, %s1874_s28  ;;  %p1883_p9 = scmp.lt.s32.totalorder %s1874_s28, %s1874_s28 }
  0x3a   : > { %p1877_p10 = pnand %p1875_p8, %p2210_p3  ;;  %p1884_p2 = por %p1883_p9, %p1882_p0 }
  0x3c   : > { %p1878_p11 = pneg %p1877_p10 }
  0x3e   : > { %p1885_p4 = pnand %p1884_p2, %p1878_p11 }
  0x40   : > { %1888 = shalt.err (!%p1885_p4)
}
  0x41   : > { %s2510_s9 = smov 64   ;;  %s2511_s11 = smov 4  }
  0x42   : > { %1723 = dma.hbm_to_vmem [thread:$0]  (!%p2194_p1), %s2518_s4, 4096, %s2188_s29, [#allocation10], %s2510_s9, %s2510_s9, %s2511_s11  }
  0x43   : > { %s2520_s5 = sld [smem:[#allocation25_spill]] }
  0x49   : > { %s1889_s17 = scalar_lea.hbm %s2520_s5, 1024 }
  0x4a   : > { %p1890_p9 = scmp.ne.s32.totalorder %s2520_s5, %s1889_s17  ;;  %p1896_p7 = scmp.lt.u32.totalorder %s1889_s17, %s2520_s5 }
  0x4c   : > { %p1892_p5 = pnand %p1890_p9, %p2210_p3 }
  0x4e   : > { %p1893_p6 = pneg %p1892_p5 }
  0x50   : > { %p1898_p8 = pnand %p1896_p7, %p1893_p6 }
  0x52   : > { %1901 = shalt.err (!%p1898_p8)
}
  0x53   : > { %s1902_s29 = scalar_lea.vmem %s2198_s10, 1024  ;;  %p1910_p2 = scmp.lt.s32.totalorder %s2198_s10, %s2198_s10 }
  0x54   : > { %p1903_p10 = scmp.ne.s32.totalorder %s2198_s10, %s1902_s29  ;;  %p1911_p4 = scmp.lt.s32.totalorder %s1902_s29, %s1902_s29 }
  0x56   : > { %p1905_p11 = pnand %p1903_p10, %p2210_p3  ;;  %p1912_p9 = por %p1911_p4, %p1910_p2 }
  0x58   : > { %p1906_p0 = pneg %p1905_p11 }
  0x5a   : > { %p1913_p5 = pnand %p1912_p9, %p1906_p0 }
  0x5c   : > { %1916 = shalt.err (!%p1913_p5)
}
  0x5d   : > { %1726 = dma.hbm_to_vmem [thread:$0]  (!%p2194_p1), %s2520_s5, 1024, %s2198_s10, [#allocation10], %s2510_s9, %s2510_s9, %s2511_s11  }
  0x5e   : > { %s1917_s16 = scalar_lea.hbm %s2501_s6, 1024 }
  0x5f   : > { %p1918_p6 = scmp.ne.s32.totalorder %s2501_s6, %s1917_s16  ;;  %p1924_p10 = scmp.lt.u32.totalorder %s1917_s16, %s2501_s6 }
  0x61   : > { %p1920_p7 = pnand %p1918_p6, %p2210_p3 }
  0x63   : > { %p1921_p8 = pneg %p1920_p7 }
  0x65   : > { %p1926_p11 = pnand %p1924_p10, %p1921_p8 }
  0x67   : > { %1929 = shalt.err (!%p1926_p11)
}
  0x68   : > { %s1930_s29 = scalar_lea.vmem %s305_s12, 1024  ;;  %p1938_p9 = scmp.lt.s32.totalorder %s305_s12, %s305_s12 }
  0x69   : > { %p1931_p0 = scmp.ne.s32.totalorder %s305_s12, %s1930_s29  ;;  %p1939_p5 = scmp.lt.s32.totalorder %s1930_s29, %s1930_s29 }
  0x6b   : > { %p1933_p2 = pnand %p1931_p0, %p2210_p3  ;;  %p1940_p12 = por %p1939_p5, %p1938_p9 }
  0x6d   : > { %p1934_p4 = pneg %p1933_p2 }
  0x6f   : > { %p1941_p13 = pnand %p1940_p12, %p1934_p4 }
  0x71   : > { %1944 = shalt.err (!%p1941_p13)
}
  0x72   : > { %1729 = dma.hbm_to_vmem [thread:$0]  (!%p2194_p1), %s2501_s6, 1024, %s305_s12, [#allocation13], %s2510_s9, %s2510_s9, %s2511_s11  }
  0x73   : > { %s47_s18 = sadd.s32 1, %s2061_s22  ;;  %s57_s13 = sld [smem:[#allocation5 + %s2061_s22]] }
  0x74   : > { %p49_p12 = scmp.ge.s32.totalorder %s47_s18, 4  ;;  %p85_p13 = scmp.ne.s32.totalorder %s2053_s20, %s2049_s1 }
  0x75   : > { %p86_p3 = scmp.eq.s32.totalorder %s2065_s23, 0  ;;  %s63_s30 = sld [smem:[#allocation4 + %s2061_s22]] }
  0x76   : > { %s2536_s18 = smov (%p49_p12, %s47_s18), 0  ;;  %p1741_p1 = scmp.lt.s32.totalorder %s2065_s23, 4 }
  0x77   : > { %s67_s14 = sld [smem:[#allocation5 + %s2536_s18]]  ;;  %p2291_p6 = por %p86_p3, %p85_p13 }
  0x78   : > { %s73_s17 = sld [smem:[#allocation4 + %s2536_s18]] }
  0x79   : > { %s1431_s12 = sadd.s32 4294967295, %s57_s13  ;;  %p2300_p8 = pnand %p1741_p1, %p2291_p6 }
  0x7a   : > { %p59_p7 = scmp.gt.s32.totalorder %s1431_s12, 0  ;;  %s78_s13 = sadd.s32 1, %s2053_s20 }
  0x7b   : > { %s1704_s28 = scalar_select %p2291_p6, [#allocation5], [#allocation15] }
  0x7c   : > { %s2538_s12 = smov (!%p59_p7, %s1431_s12), 0  ;;  %p1947_p4 = pneg %p2300_p8 }
  0x7d   : > { %s2540_s12 = smov (%p59_p7, %s2538_s12), 0  ;;  %s1433_s19 = sadd.s32 4294967295, %s67_s14 }
  0x7e   : > { %s64_s0 = sadd.s32 %s63_s30, %s2540_s12  ;;  %p69_p10 = scmp.gt.s32.totalorder %s1433_s19, 0 }
  0x7f   : > { %s1705_s29 = scalar_select %p2291_p6, %s2061_s22, 0 }
  0x80   : > { %s2542_s19 = smov (!%p69_p10, %s1433_s19), 0  ;;  %s2546_s28 = smov (!%p1741_p1, %s1704_s28), [#allocation17] }
  0x81   : > { %s2544_s19 = smov (%p69_p10, %s2542_s19), 0  ;;  %s2548_s29 = smov (!%p1741_p1, %s1705_s29), 0 }
  0x82   : > { %s74_s10 = sadd.s32 %s73_s17, %s2544_s19  ;;  %s321_s14 = sand.u32 1, %s2053_s20  }
  0x83   : > { %s75_s24 = ssub.s32 %s64_s0, %s74_s10  ;;  %s328_s30 = sld [smem:[%s2546_s28 + %s2548_s29]] }
  0x84   : > { %p76_p11 = scmp.eq.s32.totalorder %s75_s24, 0  ;;  %s1444_s11 = sshll.u32 %s321_s14, 6 }
  0x85   : > { %s1706_s12 = scalar_select %p2291_p6, [#allocation4], [#allocation16] }
  0x86   : > { %s2316_s9 = scalar_select %p76_p11, %s2053_s20, %s78_s13  }
  0x87   : > { %s2550_s12 = smov (!%p1741_p1, %s1706_s12), [#allocation18]  ;;  %s325_s17 = scalar_lea.vmem [#allocation6], %s1444_s11 }
  0x88   : > { %s334_s4 = sld [smem:[%s2550_s12 + %s2548_s29]]  ;;  %s342_s19 = sshll.u32 %s325_s17, 4  ;;  %s2323_s19 = int_to_ptr.vmem [resolvable:$true] %s342_s19 }
  0x89   : > { %s1445_s5 = sadd.s32 4294967295, %s328_s30  ;;  %s2330_s29 = scalar_lea.sflag [#allocation7], %s321_s14 }
  0x8a   : > { %p330_p0 = scmp.gt.s32.totalorder %s1445_s5, 0  ;;  %s1950_s11 = scalar_lea.hbm %s2497_s2, 4096 }
  0x8c   : > { %s2552_s5 = smov (!%p330_p0, %s1445_s5), 0 }
  0x8d   : > { %s2554_s5 = smov (%p330_p0, %s2552_s5), 0 }
  0x8e   : > { %s335_s0 = sadd.s32 %s334_s4, %s2554_s5 }
  0x8f   : > { %s1531_s10 = sshll.u32 %s335_s0, 10 }
  0x90   : > { %s2328_s15 = scalar_lea.hbm %s2497_s2, %s1531_s10 }
  0x91   : > { %s1945_s13 = scalar_lea.hbm %s2328_s15, 1024  ;;  %p1951_p12 = scmp.lt.u32.totalorder %s2328_s15, %s2497_s2 }
  0x92   : > { %p1946_p2 = scmp.ne.s32.totalorder %s2328_s15, %s1945_s13  ;;  %p1952_p13 = scmp.lt.u32.totalorder %s1950_s11, %s1945_s13 }
  0x93   : > { %p1954_p6 = scmp.lt.u32.totalorder %s1945_s13, %s2328_s15 }
  0x94   : > { %p1948_p9 = pnand %p1947_p4, %p1946_p2  ;;  %p1953_p3 = por %p1952_p13, %p1951_p12 }
  0x96   : > { %p1949_p5 = pneg %p1948_p9  ;;  %p1955_p1 = por %p1954_p6, %p1953_p3 }
  0x98   : > { %p1956_p7 = pnand %p1955_p1, %p1949_p5 }
  0x9a   : > { %1959 = shalt.err (!%p1956_p7)
}
  0x9b   : > { %s1960_s14 = scalar_lea.vmem %s2323_s19, 1024  ;;  %s2074_s17 = smov [#allocation6]  }
  0x9c   : > { %p1961_p10 = scmp.ne.s32.totalorder %s2323_s19, %s1960_s14  ;;  %s1965_s0 = sshll.u32 %s2074_s17, 4  ;;  %s1966_s0 = int_to_ptr.vmem [resolvable:$false] %s1965_s0 }
  0x9d   : > { %s1967_s10 = scalar_lea.vmem %s1966_s0, 2048  ;;  %p1968_p2 = scmp.lt.s32.totalorder %s2323_s19, %s1966_s0 }
  0x9e   : > { %p1963_p11 = pnand %p1961_p10, %p1947_p4  ;;  %p1969_p9 = scmp.lt.s32.totalorder %s1967_s10, %s1960_s14 }
  0xa0   : > { %p1964_p0 = pneg %p1963_p11  ;;  %p1970_p12 = por %p1969_p9, %p1968_p2 }
  0xa2   : > { %p1971_p13 = pnand %p1970_p12, %p1964_p0 }
  0xa4   : > { %1974 = shalt.err (!%p1971_p13)
}
  0xa5   : > { %s2523_s24 = smov 4   ;;  %s2524_s28 = smov 64  }
  0xa6   : > { %1737 = dma.hbm_to_vmem [thread:$0]  (!%p2300_p8), %s2328_s15, 1024, %s2323_s19, %s2330_s29, %s2524_s28, %s2524_s28, %s2523_s24  }
  0xa7   : > { %p2525_p4 = scmp.ne.s32.totalorder %s2516_s27, 0 }
  0xa8   : > { %s382_s13 = sand.u32 (!%p2525_p4), 1, %s2049_s1   ;;  %p2526_p5 = scmp.ne.s32.totalorder (!%p2525_p4), %s2515_s26, 0 }
  0xa9   : > { %380 = sbr.rel (%p2525_p4) target bundleno = 1022 (0x3fe), region = 44  ;;  %s1450_s4 = sshll.u32 (!%p2525_p4), %s382_s13, 6 }
  0xaa   : > { %s383_s5 = scalar_lea.sflag (!%p2525_p4), [#allocation7], %s382_s13  ;;  %s2364_s11 = scalar_lea.vmem (!%p2525_p4), [#allocation6], %s1450_s4 }
  0xb0   : > { %2028 = dma.done.wait (%p2526_p5), %s383_s5, 1024  }
  0xb1   : > { %2030 = vsyncadd (%p2526_p5), %s383_s5, 4294966272  ;;  %p2527_p3 = scmp.ne.s32.totalorder %s2514_s25, 0 }
  0xb3   : > { %2032 = dma.done.wait (%p2527_p3), [#allocation10], 5120  }
  0xb4   : > { %2034 = vsyncadd (%p2527_p3), [#allocation10], 4294962176 }
  0xb5   : > { %2036 = dma.done.wait (%p2527_p3), [#allocation13], 1024  }
  0xb6   : > { %2038 = vsyncadd (%p2527_p3), [#allocation13], 4294966272  ;;  %p472_p8 = scmp.eq.s32.totalorder %s2057_s21, 0  ;;  %s448_s27 = sld [smem:[#allocation5 + %s2057_s21]] }
  0xb7   : > { %s454_s16 = sld [smem:[#allocation4 + %s2057_s21]]  ;;  %v478_v0 = vlaneseq (%p472_p8)  ;;  %v2075_v1 = vmov (%p472_p8), 0.0  }
  0xb8   : > { %529 = vst [vmem:[#allocation14] sm:$0xff] (%p472_p8), %v2075_v1  ;;  %530 = vst [vmem:[#allocation14 + $0x8] sm:$0xff] (%p472_p8), %v2075_v1 }
  0xb9   : > { %531 = vst [vmem:[#allocation14 + $0x10] sm:$0xff] (%p472_p8), %v2075_v1  ;;  %532 = vst [vmem:[#allocation14 + $0x18] sm:$0xff] (%p472_p8), %v2075_v1  ;;  %v479_v2 = vshrl.u32 (%p472_p8), %v478_v0, 7 }
  0xba   : > { %533 = vst [vmem:[#allocation14 + $0x20] sm:$0xff] (%p472_p8), %v2075_v1  ;;  %534 = vst [vmem:[#allocation14 + $0x28] sm:$0xff] (%p472_p8), %v2075_v1 }
  0xbb   : > { %535 = vst [vmem:[#allocation14 + $0x30] sm:$0xff] (%p472_p8), %v2075_v1  ;;  %536 = vst [vmem:[#allocation14 + $0x38] sm:$0xff] (%p472_p8), %v2075_v1  ;;  %v480_v3 = vadd.s32 (%p472_p8), 8, %v479_v2  ;;  %v481_v4 = vadd.s32 (%p472_p8), 16, %v479_v2  ;;  %v482_v5 = vadd.s32 (%p472_p8), 24, %v479_v2  ;;  %v483_v6 = vadd.s32 (%p472_p8), 32, %v479_v2 }
  0xbc   : > { %s1454_s26 = sadd.s32 4294967295, %s448_s27  ;;  %537 = vst [vmem:[#allocation14 + $0x40] sm:$0xff] (%p472_p8), %v2075_v1  ;;  %538 = vst [vmem:[#allocation14 + $0x48] sm:$0xff] (%p472_p8), %v2075_v1  ;;  %v484_v7 = vadd.s32 (%p472_p8), 40, %v479_v2  ;;  %v485_v8 = vadd.s32 (%p472_p8), 48, %v479_v2  ;;  %v486_v9 = vadd.s32 (%p472_p8), 56, %v479_v2 }
  0xbd   : > { %p450_p6 = scmp.gt.s32.totalorder %s1454_s26, 0  ;;  %539 = vst [vmem:[#allocation14 + $0x50] sm:$0xff] (%p472_p8), %v2075_v1  ;;  %540 = vst [vmem:[#allocation14 + $0x58] sm:$0xff] (%p472_p8), %v2075_v1  ;;  %v487_v10 = vadd.s32 (%p472_p8), 64, %v479_v2  ;;  %v488_v11 = vadd.s32 (%p472_p8), 72, %v479_v2  ;;  %v489_v12 = vadd.s32 (%p472_p8), 80, %v479_v2 }
  0xbe   : > { %541 = vst [vmem:[#allocation14 + $0x60] sm:$0xff] (%p472_p8), %v2075_v1  ;;  %542 = vst [vmem:[#allocation14 + $0x68] sm:$0xff] (%p472_p8), %v2075_v1  ;;  %v490_v13 = vadd.s32 (%p472_p8), 88, %v479_v2  ;;  %v491_v14 = vadd.s32 (%p472_p8), 96, %v479_v2  ;;  %v492_v15 = vadd.s32 (%p472_p8), 104, %v479_v2  ;;  %v493_v16 = vadd.s32 (%p472_p8), 112, %v479_v2 }
  0xbf   : > { %s2556_s26 = smov (!%p450_p6, %s1454_s26), 0  ;;  %477 = sbr.rel (!%p472_p8) target bundleno = 201 (0xc9), region = 64 }
  0xc0   : > { %s2558_s26 = smov (%p450_p6, %s2556_s26), 0  ;;  %543 = vst [vmem:[#allocation14 + $0x70] sm:$0xff] (%p472_p8), %v2075_v1  ;;  %544 = vst [vmem:[#allocation14 + $0x78] sm:$0xff] (%p472_p8), %v2075_v1  ;;  %v494_v17 = vadd.s32 (%p472_p8), 120, %v479_v2 }
  0xc1   : > { %s455_s19 = sadd.s32 %s454_s16, %s2558_s26  ;;  %513 = vst [vmem:[#allocation2] sm:$0xff] (%p472_p8), %v479_v2  ;;  %514 = vst [vmem:[#allocation2 + $0x8] sm:$0xff] (%p472_p8), %v480_v3 }
  0xc2   : > { %p456_p1 = scmp.lt.s32.totalorder %s455_s19, 3  ;;  %515 = vst [vmem:[#allocation2 + $0x10] sm:$0xff] (%p472_p8), %v481_v4  ;;  %516 = vst [vmem:[#allocation2 + $0x18] sm:$0xff] (%p472_p8), %v482_v5 }
  0xc3   : > { %517 = vst [vmem:[#allocation2 + $0x20] sm:$0xff] (%p472_p8), %v483_v6  ;;  %518 = vst [vmem:[#allocation2 + $0x28] sm:$0xff] (%p472_p8), %v484_v7 }
  0xc4   : > { %s2560_s19 = smov (!%p456_p1, %s455_s19), 3  ;;  %519 = vst [vmem:[#allocation2 + $0x30] sm:$0xff] (%p472_p8), %v485_v8  ;;  %520 = vst [vmem:[#allocation2 + $0x38] sm:$0xff] (%p472_p8), %v486_v9 }
  0xc5   : > { %s458_s25 = scalar_lea.vmem %s2498_s3, %s2560_s19  ;;  %521 = vst [vmem:[#allocation2 + $0x40] sm:$0xff] (%p472_p8), %v487_v10  ;;  %522 = vst [vmem:[#allocation2 + $0x48] sm:$0xff] (%p472_p8), %v488_v11 }
  0xc6   : > { %523 = vst [vmem:[#allocation2 + $0x50] sm:$0xff] %v489_v12  ;;  %524 = vst [vmem:[#allocation2 + $0x58] sm:$0xff] %v490_v13 }
  0xc7   : > { %525 = vst [vmem:[#allocation2 + $0x60] sm:$0xff] %v491_v14  ;;  %526 = vst [vmem:[#allocation2 + $0x68] sm:$0xff] %v492_v15 }
  0xc8   : > { %527 = vst [vmem:[#allocation2 + $0x70] sm:$0xff] %v493_v16  ;;  %528 = vst [vmem:[#allocation2 + $0x78] sm:$0xff] %v494_v17 }
  0xc9 PF: > { %s547_s30 = sld [smem:[#allocation5 + %s2057_s21]] }
  0xcf   : > { %p1458_p7 = scmp.le.s32.totalorder %s547_s30, 0 }
  0xd0   : > { %s1536_s12 = sshll.u32 (!%p1458_p7), %s2057_s21, 6  ;;  %v1815_v18 = vld [vmem:[%s2364_s11] sm:$0xff] (!%p1458_p7)   ;;  %v1816_v27 = vld [vmem:[%s2364_s11 + $0x8] sm:$0xff] (!%p1458_p7)   ;;  %v1817_v28 = vld [vmem:[%s2364_s11 + $0x10] sm:$0xff] (!%p1458_p7)   ;;  %v2076_v37 = vmov (!%p1458_p7), 1.0|1.0  }
  0xd1   : > { %551 = sbr.rel (%p1458_p7) target bundleno = 734 (0x2de), region = 68  ;;  %s570_s14 = scalar_lea.vmem (!%p1458_p7), [#allocation9], %s1536_s12  ;;  %1602 = vmatprep.mubr.bf16.mxu0 (!%p1458_p7), %v1815_v18  ;;  %v1818_v29 = vld [vmem:[%s2364_s11 + $0x18] sm:$0xff] (!%p1458_p7)   ;;  %v1819_v30 = vld [vmem:[%s2364_s11 + $0x20] sm:$0xff] (!%p1458_p7)   ;;  %v1820_v31 = vld [vmem:[%s2364_s11 + $0x28] sm:$0xff] (!%p1458_p7)  }
  0xd2   : > { %v1807_v19 = vld [vmem:[%s570_s14] sm:$0xff] (!%p1458_p7)   ;;  %v1808_v20 = vld [vmem:[%s570_s14 + $0x8] sm:$0xff] (!%p1458_p7)   ;;  %v1809_v21 = vld [vmem:[%s570_s14 + $0x10] sm:$0xff] (!%p1458_p7)  }
  0xd3   : > { %1586 = vmatprep.subr.bf16.mxu0 (!%p1458_p7), %v1807_v19  ;;  %v1810_v22 = vld [vmem:[%s570_s14 + $0x18] sm:$0xff] (!%p1458_p7)   ;;  %v1811_v23 = vld [vmem:[%s570_s14 + $0x20] sm:$0xff] (!%p1458_p7)   ;;  %v1812_v24 = vld [vmem:[%s570_s14 + $0x28] sm:$0xff] (!%p1458_p7)  }
  0xd4   : > { %1587 = vmatpush3.bf16.msra.mxu0 (!%p1458_p7), %v1807_v19  ;;  %v1813_v25 = vld [vmem:[%s570_s14 + $0x30] sm:$0xff] (!%p1458_p7)   ;;  %v1814_v26 = vld [vmem:[%s570_s14 + $0x38] sm:$0xff] (!%p1458_p7)   ;;  %v1822_v33 = vld [vmem:[%s2364_s11 + $0x38] sm:$0xff] (!%p1458_p7)  }
  0xd5   : > { %1588 = vmatprep.subr.bf16.mxu0 (!%p1458_p7), %v1808_v20  ;;  %v1821_v32 = vld [vmem:[%s2364_s11 + $0x30] sm:$0xff] (!%p1458_p7)   ;;  %v780_v34 = vld [vmem:[#allocation2] sm:$0xff] (!%p1458_p7)  ;;  %v781_v35 = vld [vmem:[#allocation2 + $0x8] sm:$0xff] (!%p1458_p7) }
  0xd6   : > { %v2402_v36 = vld [vmem:[%s458_s25] ss:$0 sm:$0xff] (!%p1458_p7)  ;;  %v782_v62 = vld [vmem:[#allocation2 + $0x10] sm:$0xff] (!%p1458_p7)  ;;  %v784_v0 = vld [vmem:[#allocation2 + $0x20] sm:$0xff] (!%p1458_p7) }
  0xd7   : > { %vm801_vm0 = vcmp.eq.s32.totalorder (!%p1458_p7), %v780_v34, %v2402_v36  ;;  %vm802_vm1 = vcmp.eq.s32.totalorder (!%p1458_p7), %v781_v35, %v2402_v36  ;;  %v783_v63 = vld [vmem:[#allocation2 + $0x18] sm:$0xff] (!%p1458_p7)  ;;  %v785_v1 = vld [vmem:[#allocation2 + $0x28] sm:$0xff] (!%p1458_p7)  ;;  %vm803_vm3 = vcmp.eq.s32.totalorder (!%p1458_p7), %v782_v62, %v2402_v36  ;;  %vm805_vm5 = vcmp.eq.s32.totalorder (!%p1458_p7), %v784_v0, %v2402_v36  ;;  %v786_v2 = vld [vmem:[#allocation2 + $0x30] sm:$0xff] (!%p1458_p7) }
  0xd8   : > { %1589 = vmatpush3.bf16.msra.mxu0 %v1808_v20  ;;  %vm1478_vm2 = vmpackc.low %vm802_vm1, %vm801_vm0  ;;  %vm804_vm4 = vcmp.eq.s32.totalorder %v783_v63, %v2402_v36  ;;  %vm806_vm6 = vcmp.eq.s32.totalorder %v785_v1, %v2402_v36  ;;  %v787_v3 = vld [vmem:[#allocation2 + $0x38] sm:$0xff]  ;;  %v788_v4 = vld [vmem:[#allocation2 + $0x40] sm:$0xff]  ;;  %vm807_vm9 = vcmp.eq.s32.totalorder %v786_v2, %v2402_v36 }
  0xd9   : > { %1590 = vmatprep.subr.bf16.mxu0 %v1809_v21  ;;  %1634 = vmatprep.mubr.msk.bf16.mxu1 %vm1478_vm2, %v2076_v37  ;;  %vm1480_vm7 = vmpackc.low %vm804_vm4, %vm803_vm3  ;;  %v789_v5 = vld [vmem:[#allocation2 + $0x48] sm:$0xff]  ;;  %vm808_vm10 = vcmp.eq.s32.totalorder %v787_v3, %v2402_v36  ;;  %vm809_vm11 = vcmp.eq.s32.totalorder %v788_v4, %v2402_v36  ;;  %v790_v6 = vld [vmem:[#allocation2 + $0x50] sm:$0xff] }
  0xda   : > { %vm1482_vm8 = vmpackc.low %vm806_vm6, %vm805_vm5  ;;  %vm810_vm12 = vcmp.eq.s32.totalorder %v789_v5, %v2402_v36  ;;  %v791_v7 = vld [vmem:[#allocation2 + $0x58] sm:$0xff]  ;;  %v792_v8 = vld [vmem:[#allocation2 + $0x60] sm:$0xff]  ;;  %vm811_vm15 = vcmp.eq.s32.totalorder %v790_v6, %v2402_v36 }
  0xdb   : > { %vm1484_vm13 = vmpackc.low %vm808_vm10, %vm807_vm9  ;;  %v793_v9 = vld [vmem:[#allocation2 + $0x68] sm:$0xff]  ;;  %vm812_vm0 = vcmp.eq.s32.totalorder %v791_v7, %v2402_v36  ;;  %vm813_vm1 = vcmp.eq.s32.totalorder %v792_v8, %v2402_v36  ;;  %v794_v10 = vld [vmem:[#allocation2 + $0x70] sm:$0xff] }
  0xdc   : > { %1591 = vmatpush3.bf16.msra.mxu0 %v1809_v21  ;;  %vm1486_vm14 = vmpackc.low %vm810_vm12, %vm809_vm11  ;;  %vm814_vm2 = vcmp.eq.s32.totalorder %v793_v9, %v2402_v36  ;;  %v795_v11 = vld [vmem:[#allocation2 + $0x78] sm:$0xff]  ;;  %vm815_vm5 = vcmp.eq.s32.totalorder %v794_v10, %v2402_v36  ;;  %v835_v12 = vld [vmem:[#allocation14 + $0x10] sm:$0xff] }
  0xdd   : > { %1592 = vmatprep.subr.bf16.mxu0 %v1810_v22  ;;  %vm1488_vm3 = vmpackc.low %vm812_vm0, %vm811_vm15  ;;  %vm816_vm6 = vcmp.eq.s32.totalorder %v795_v11, %v2402_v36  ;;  %v833_v13 = vld [vmem:[#allocation14] sm:$0xff]  ;;  %v836_v15 = vld [vmem:[#allocation14 + $0x18] sm:$0xff] }
  0xde   : > { %vm1490_vm4 = vmpackc.low %vm814_vm2, %vm813_vm1  ;;  %v834_v18 = vld [vmem:[#allocation14 + $0x8] sm:$0xff]  ;;  %v843_v36 = vld [vmem:[#allocation14 + $0x50] sm:$0xff] }
  0xe0   : > { %1593 = vmatpush3.bf16.msra.mxu0 %v1810_v22 }
  0xe1   : > { %1594 = vmatprep.subr.bf16.mxu0 %v1811_v23 }
  0xe4   : > { %1595 = vmatpush3.bf16.msra.mxu0 %v1811_v23 }
  0xe5   : > { %1596 = vmatprep.subr.bf16.mxu0 %v1812_v24 }
  0xe8   : > { %1597 = vmatpush3.bf16.msra.mxu0 %v1812_v24  ;;  %v839_v24 = vld [vmem:[#allocation14 + $0x30] sm:$0xff] }
  0xe9   : > { %1598 = vmatprep.subr.bf16.mxu0 %v1813_v25 }
  0xec   : > { %1599 = vmatpush3.bf16.msra.mxu0 %v1813_v25  ;;  %v837_v25 = vld [vmem:[#allocation14 + $0x20] sm:$0xff] }
  0xed   : > { %1600 = vmatprep.subr.bf16.mxu0 %v1814_v26 }
  0xf0   : > { %1601 = vmatpush3.bf16.msra.mxu0 %v1814_v26 }
  0xf3   : > { %1603 = vmatmul.mubr.bf16.vlgmr.msra.gmra.mrb[0].mxu0 %v1816_v27  ;;  %v840_v27 = vld [vmem:[#allocation14 + $0x38] sm:$0xff] }
  0xf4   : > { %1606 = vmatprep.mubr.bf16.mxu0 %v1817_v28 }
  0xfb   : > { %1607 = vmatmul.mubr.bf16.gmra.mrb[4].mxu0 %v1818_v29 }
  0xfc   : > { %1610 = vmatprep.mubr.bf16.mxu0 %v1819_v30  ;;  %v838_v30 = vld [vmem:[#allocation14 + $0x28] sm:$0xff] }
 0x103   : > { %1611 = vmatmul.mubr.bf16.gmra.mrb[8].mxu0 %v1820_v31 }
 0x104   : > { %1614 = vmatprep.mubr.bf16.mxu0 %v1821_v32 }
 0x10b   : > { %1615 = vmatmul.mubr.bf16.gmra.mrb[12].mxu0 %v1822_v33 }
 0x1c6   : > { %v1604_v38 = vpop.f32.mrb[0].mxu0 }
 0x1c7   : > { %v717_v39 = vpop.f32.mrb[1].mxu0 }
 0x1c8   : > { %v1605_v40 = vpop.f32.mrb[2].mxu0 }
 0x1c9   : > { %v858_v41 = vpack.c.bf16 %v1605_v40, %v1604_v38  ;;  %v720_v42 = vpop.f32.mrb[3].mxu0 }
 0x1ca   : > { %v857_v43 = vpack.c.bf16 %v720_v42, %v717_v39  ;;  %v844_v39 = vld [vmem:[#allocation14 + $0x58] sm:$0xff]  ;;  %v842_v42 = vld [vmem:[#allocation14 + $0x48] sm:$0xff] }
 0x1cc   : > { %1618 = vmatprep.subr.bf16.mxu1 %v857_v43 }
 0x1cd   : > { %1619 = vmatpush3.bf16.msra.mxu1 %v857_v43 }
 0x1ce   : > { %v1608_v44 = vpop.f32.mrb[4].mxu0  ;;  %1620 = vmatprep.subr.bf16.mxu1 %v858_v41 }
 0x1cf   : > { %v733_v45 = vpop.f32.mrb[5].mxu0 }
 0x1d0   : > { %v1609_v46 = vpop.f32.mrb[6].mxu0 }
 0x1d1   : > { %v860_v47 = vpack.c.bf16 %v1609_v46, %v1608_v44  ;;  %v736_v48 = vpop.f32.mrb[7].mxu0  ;;  %1621 = vmatpush3.bf16.msra.mxu1 %v858_v41 }
 0x1d2   : > { %v859_v49 = vpack.c.bf16 %v736_v48, %v733_v45  ;;  %v847_v48 = vld [vmem:[#allocation14 + $0x70] sm:$0xff] }
 0x1d4   : > { %1622 = vmatprep.subr.bf16.mxu1 %v859_v49 }
 0x1d5   : > { %1623 = vmatpush3.bf16.msra.mxu1 %v859_v49  ;;  %v845_v49 = vld [vmem:[#allocation14 + $0x60] sm:$0xff] }
 0x1d6   : > { %v1612_v50 = vpop.f32.mrb[8].mxu0  ;;  %1624 = vmatprep.subr.bf16.mxu1 %v860_v47 }
 0x1d7   : > { %v749_v51 = vpop.f32.mrb[9].mxu0 }
 0x1d8   : > { %v1613_v52 = vpop.f32.mrb[10].mxu0 }
 0x1d9   : > { %v862_v53 = vpack.c.bf16 %v1613_v52, %v1612_v50  ;;  %v752_v54 = vpop.f32.mrb[11].mxu0  ;;  %1625 = vmatpush3.bf16.msra.mxu1 %v860_v47 }
 0x1da   : > { %v861_v55 = vpack.c.bf16 %v752_v54, %v749_v51  ;;  %v848_v51 = vld [vmem:[#allocation14 + $0x78] sm:$0xff]  ;;  %v846_v54 = vld [vmem:[#allocation14 + $0x68] sm:$0xff] }
 0x1dc   : > { %1626 = vmatprep.subr.bf16.mxu1 %v861_v55 }
 0x1dd   : > { %1627 = vmatpush3.bf16.msra.mxu1 %v861_v55 }
 0x1de   : > { %v1616_v56 = vpop.f32.mrb[12].mxu0  ;;  %1628 = vmatprep.subr.bf16.mxu1 %v862_v53 }
 0x1df   : > { %v765_v57 = vpop.f32.mrb[13].mxu0 }
 0x1e0   : > { %v1617_v58 = vpop.f32.mrb[14].mxu0 }
 0x1e1   : > { %v864_v59 = vpack.c.bf16 %v1617_v58, %v1616_v56  ;;  %v768_v60 = vpop.f32.mrb[15].mxu0  ;;  %1629 = vmatpush3.bf16.msra.mxu1 %v862_v53 }
 0x1e2   : > { %v863_v61 = vpack.c.bf16 %v768_v60, %v765_v57 }
 0x1e4   : > { %1630 = vmatprep.subr.bf16.mxu1 %v863_v61 }
 0x1e5   : > { %1631 = vmatpush3.bf16.msra.mxu1 %v863_v61 }
 0x1e6   : > { %1632 = vmatprep.subr.bf16.mxu1 %v864_v59 }
 0x1e9   : > { %1633 = vmatpush3.bf16.msra.mxu1 %v864_v59 }
 0x1ec   : > { %1635 = vmatmul.mubr.msk.bf16.vlgmr.msra.gmra.mrb[0].mxu1 %vm1480_vm7, %v2076_v37  ;;  %vm1492_vm7 = vmpackc.low %vm816_vm6, %vm815_vm5 }
 0x1ed   : > { %1638 = vmatprep.mubr.msk.bf16.mxu1 %vm1482_vm8, %v2076_v37 }
 0x1f4   : > { %1639 = vmatmul.mubr.msk.bf16.gmra.mrb[4].mxu1 %vm1484_vm13, %v2076_v37 }
 0x1f5   : > { %1642 = vmatprep.mubr.msk.bf16.mxu1 %vm1486_vm14, %v2076_v37 }
 0x1fc   : > { %1643 = vmatmul.mubr.msk.bf16.gmra.mrb[8].mxu1 %vm1488_vm3, %v2076_v37 }
 0x1fd   : > { %1646 = vmatprep.mubr.msk.bf16.mxu1 %vm1490_vm4, %v2076_v37 }
 0x204   : > { %1647 = vmatmul.mubr.msk.bf16.gmra.mrb[12].mxu1 %vm1492_vm7, %v2076_v37  ;;  %v841_v37 = vld [vmem:[#allocation14 + $0x40] sm:$0xff] }
 0x2bf   : > { %v1636_v14 = vpop.f32.mrb[0].mxu1 }
 0x2c0   : > { %v964_v16 = vadd.f32 %v1636_v14, %v835_v12  ;;  %v899_v17 = vpop.f32.mrb[1].mxu1 }
 0x2c1   : > { %v962_v19 = vadd.f32 %v899_v17, %v833_v13  ;;  %v1637_v20 = vpop.f32.mrb[2].mxu1 }
 0x2c2   : > { %980 = vst [vmem:[#allocation14 + $0x10] sm:$0xff] %v964_v16  ;;  %v965_v21 = vadd.f32 %v1637_v20, %v836_v15  ;;  %v902_v22 = vpop.f32.mrb[3].mxu1 }
 0x2c3   : > { %978 = vst [vmem:[#allocation14] sm:$0xff] %v962_v19  ;;  %v963_v23 = vadd.f32 %v902_v22, %v834_v18 }
 0x2c4   : > { %981 = vst [vmem:[#allocation14 + $0x18] sm:$0xff] %v965_v21 }
 0x2c5   : > { %979 = vst [vmem:[#allocation14 + $0x8] sm:$0xff] %v963_v23 }
 0x2c7   : > { %v1640_v26 = vpop.f32.mrb[4].mxu1 }
 0x2c8   : > { %v968_v28 = vadd.f32 %v1640_v26, %v839_v24  ;;  %v915_v29 = vpop.f32.mrb[5].mxu1 }
 0x2c9   : > { %v966_v31 = vadd.f32 %v915_v29, %v837_v25  ;;  %v1641_v32 = vpop.f32.mrb[6].mxu1 }
 0x2ca   : > { %984 = vst [vmem:[#allocation14 + $0x30] sm:$0xff] %v968_v28  ;;  %v969_v33 = vadd.f32 %v1641_v32, %v840_v27  ;;  %v918_v34 = vpop.f32.mrb[7].mxu1 }
 0x2cb   : > { %982 = vst [vmem:[#allocation14 + $0x20] sm:$0xff] %v966_v31  ;;  %v967_v35 = vadd.f32 %v918_v34, %v838_v30 }
 0x2cc   : > { %985 = vst [vmem:[#allocation14 + $0x38] sm:$0xff] %v969_v33 }
 0x2cd   : > { %983 = vst [vmem:[#allocation14 + $0x28] sm:$0xff] %v967_v35 }
 0x2cf   : > { %v1644_v38 = vpop.f32.mrb[8].mxu1 }
 0x2d0   : > { %v972_v40 = vadd.f32 %v1644_v38, %v843_v36  ;;  %v931_v41 = vpop.f32.mrb[9].mxu1 }
 0x2d1   : > { %v970_v43 = vadd.f32 %v931_v41, %v841_v37  ;;  %v1645_v44 = vpop.f32.mrb[10].mxu1 }
 0x2d2   : > { %988 = vst [vmem:[#allocation14 + $0x50] sm:$0xff] %v972_v40  ;;  %v973_v45 = vadd.f32 %v1645_v44, %v844_v39  ;;  %v934_v46 = vpop.f32.mrb[11].mxu1 }
 0x2d3   : > { %986 = vst [vmem:[#allocation14 + $0x40] sm:$0xff] %v970_v43  ;;  %v971_v47 = vadd.f32 %v934_v46, %v842_v42 }
 0x2d4   : > { %989 = vst [vmem:[#allocation14 + $0x58] sm:$0xff] %v973_v45 }
 0x2d5   : > { %987 = vst [vmem:[#allocation14 + $0x48] sm:$0xff] %v971_v47 }
 0x2d7   : > { %v1648_v50 = vpop.f32.mrb[12].mxu1 }
 0x2d8   : > { %v976_v52 = vadd.f32 %v1648_v50, %v847_v48  ;;  %v947_v53 = vpop.f32.mrb[13].mxu1 }
 0x2d9   : > { %v974_v55 = vadd.f32 %v947_v53, %v845_v49  ;;  %v1649_v56 = vpop.f32.mrb[14].mxu1 }
 0x2da   : > { %992 = vst [vmem:[#allocation14 + $0x70] sm:$0xff] %v976_v52  ;;  %v977_v57 = vadd.f32 %v1649_v56, %v848_v51  ;;  %v950_v58 = vpop.f32.mrb[15].mxu1 }
 0x2db   : > { %990 = vst [vmem:[#allocation14 + $0x60] sm:$0xff] %v974_v55  ;;  %v975_v59 = vadd.f32 %v950_v58, %v846_v54 }
 0x2dc   : > { %993 = vst [vmem:[#allocation14 + $0x78] sm:$0xff] %v977_v57 }
 0x2dd   : > { %991 = vst [vmem:[#allocation14 + $0x68] sm:$0xff] %v975_v59 }
 0x2de PF: > { %p994_p10 = scmp.eq.s32.totalorder %s2057_s21, 3 }
 0x2df   : > { %v1823_v60 = vld [vmem:[#allocation12] sm:$0xff] (%p994_p10)   ;;  %v1824_v61 = vld [vmem:[#allocation12 + $0x8] sm:$0xff] (%p994_p10)   ;;  %v1825_v62 = vld [vmem:[#allocation12 + $0x10] sm:$0xff] (%p994_p10)  }
 0x2e0   : > { %998 = sbr.rel (!%p994_p10) target bundleno = 996 (0x3e4), region = 72  ;;  %1650 = vmatprep.subr.bf16.mxu0 (%p994_p10), %v1823_v60  ;;  %1682 = vmatprep.subr.bf16.mxu1 (%p994_p10), %v1823_v60  ;;  %v1826_v63 = vld [vmem:[#allocation12 + $0x18] sm:$0xff] (%p994_p10)   ;;  %v1831_v0 = vld [vmem:[#allocation11] sm:$0xff] (%p994_p10)   ;;  %v1828_v3 = vld [vmem:[#allocation12 + $0x28] sm:$0xff] (%p994_p10)  }
 0x2e1   : > { %1651 = vmatpush3.bf16.msra.mxu0 (%p994_p10), %v1823_v60  ;;  %1690 = vmatpush3.bf16.msra.mxu1 (%p994_p10), %v1823_v60  ;;  %v1832_v1 = vld [vmem:[#allocation11 + $0x20] sm:$0xff] (%p994_p10)   ;;  %v1829_v4 = vld [vmem:[#allocation12 + $0x30] sm:$0xff] (%p994_p10)   ;;  %v1830_v5 = vld [vmem:[#allocation12 + $0x38] sm:$0xff] (%p994_p10)  }
 0x2e2   : > { %1652 = vmatprep.subr.bf16.mxu0 (%p994_p10), %v1824_v61  ;;  %1683 = vmatprep.subr.bf16.mxu1 (%p994_p10), %v1824_v61  ;;  %v1827_v2 = vld [vmem:[#allocation12 + $0x20] sm:$0xff] (%p994_p10)   ;;  %v1833_v6 = vld [vmem:[#allocation11 + $0x8] sm:$0xff] (%p994_p10)   ;;  %v1835_v8 = vld [vmem:[#allocation11 + $0x10] sm:$0xff] (%p994_p10)  }
 0x2e3   : > { %1666 = vmatprep.mubr.bf16.mxu0 (%p994_p10), %v1831_v0  ;;  %1674 = vmatprep.mubr.bf16.mxu1 (%p994_p10), %v1832_v1  ;;  %v1834_v7 = vld [vmem:[#allocation11 + $0x28] sm:$0xff] (%p994_p10)   ;;  %v1836_v9 = vld [vmem:[#allocation11 + $0x30] sm:$0xff] (%p994_p10)   ;;  %v1837_v10 = vld [vmem:[#allocation11 + $0x18] sm:$0xff] (%p994_p10)  }
 0x2e4   : > { %v1838_v11 = vld [vmem:[#allocation11 + $0x38] sm:$0xff] (%p994_p10)   ;;  %v1001_v12 = vld [vmem:[#allocation14 + $0x10] sm:$0xff] (%p994_p10)  ;;  %v999_v15 = vld [vmem:[#allocation14] sm:$0xff] (%p994_p10) }
 0x2e5   : > { %1653 = vmatpush3.bf16.msra.mxu0 (%p994_p10), %v1824_v61  ;;  %1691 = vmatpush3.bf16.msra.mxu1 (%p994_p10), %v1824_v61  ;;  %v2432_v13 = vld [vmem:[%s2502_s7] ss:$0 sm:$0xff] (%p994_p10)  ;;  %v1009_v14 = vld [vmem:[#allocation14 + $0x50] sm:$0xff] (%p994_p10)  ;;  %v1007_v16 = vld [vmem:[#allocation14 + $0x40] sm:$0xff] (%p994_p10) }
 0x2e6   : > { %1654 = vmatprep.subr.bf16.mxu0 (%p994_p10), %v1825_v62  ;;  %1684 = vmatprep.subr.bf16.mxu1 (%p994_p10), %v1825_v62  ;;  %v1002_v17 = vld [vmem:[#allocation14 + $0x18] sm:$0xff] (%p994_p10)  ;;  %v1024_v19 = vadd.f32 (%p994_p10), %v2432_v13, %v1001_v12  ;;  %v1032_v20 = vadd.f32 (%p994_p10), %v2432_v13, %v1009_v14  ;;  %v1000_v21 = vld [vmem:[#allocation14 + $0x8] sm:$0xff] (%p994_p10)  ;;  %v1022_v23 = vadd.f32 (%p994_p10), %v2432_v13, %v999_v15  ;;  %v1005_v39 = vld [vmem:[#allocation14 + $0x30] sm:$0xff] (%p994_p10) }
 0x2e7   : > { %v1010_v18 = vld [vmem:[#allocation14 + $0x58] sm:$0xff]  ;;  %v1008_v22 = vld [vmem:[#allocation14 + $0x48] sm:$0xff]  ;;  %v1030_v24 = vadd.f32 %v2432_v13, %v1007_v16  ;;  %v1025_v25 = vadd.f32 %v2432_v13, %v1002_v17  ;;  %v1023_v29 = vadd.f32 %v2432_v13, %v1000_v21  ;;  %v1013_v40 = vld [vmem:[#allocation14 + $0x70] sm:$0xff]  ;;  %v1028_v57 = vadd.f32 %v2432_v13, %v1005_v39 }
 0x2e8   : > { %v1033_v26 = vadd.f32 %v2432_v13, %v1010_v18  ;;  %v1031_v30 = vadd.f32 %v2432_v13, %v1008_v22  ;;  %v1003_v47 = vld [vmem:[#allocation14 + $0x20] sm:$0xff]  ;;  %v1006_v53 = vld [vmem:[#allocation14 + $0x38] sm:$0xff]  ;;  %v1036_v58 = vadd.f32 %v2432_v13, %v1013_v40  ;;  %v1004_v59 = vld [vmem:[#allocation14 + $0x28] sm:$0xff] }
 0x2e9   : > { %1655 = vmatpush3.bf16.msra.mxu0 %v1825_v62  ;;  %1692 = vmatpush3.bf16.msra.mxu1 %v1825_v62  ;;  %v1011_v48 = vld [vmem:[#allocation14 + $0x60] sm:$0xff]  ;;  %v1014_v54 = vld [vmem:[#allocation14 + $0x78] sm:$0xff]  ;;  %v1012_v60 = vld [vmem:[#allocation14 + $0x68] sm:$0xff]  ;;  %v1029_v1 = vadd.f32 %v2432_v13, %v1006_v53 }
 0x2ea   : > { %1656 = vmatprep.subr.bf16.mxu0 %v1826_v63  ;;  %1685 = vmatprep.subr.bf16.mxu1 %v1826_v63  ;;  %v1034_v0 = vadd.f32 %v2432_v13, %v1011_v48 }
 0x2ed   : > { %1657 = vmatpush3.bf16.msra.mxu0 %v1826_v63  ;;  %1693 = vmatpush3.bf16.msra.mxu1 %v1826_v63  ;;  %v1026_v63 = vadd.f32 %v2432_v13, %v1003_v47 }
 0x2ee   : > { %1658 = vmatprep.subr.bf16.mxu0 %v1827_v2  ;;  %1686 = vmatprep.subr.bf16.mxu1 %v1827_v2 }
 0x2f1   : > { %1659 = vmatpush3.bf16.msra.mxu0 %v1827_v2  ;;  %1694 = vmatpush3.bf16.msra.mxu1 %v1827_v2  ;;  %v1037_v2 = vadd.f32 %v2432_v13, %v1014_v54 }
 0x2f2   : > { %1660 = vmatprep.subr.bf16.mxu0 %v1828_v3  ;;  %1687 = vmatprep.subr.bf16.mxu1 %v1828_v3 }
 0x2f5   : > { %1661 = vmatpush3.bf16.msra.mxu0 %v1828_v3  ;;  %1695 = vmatpush3.bf16.msra.mxu1 %v1828_v3 }
 0x2f6   : > { %1662 = vmatprep.subr.bf16.mxu0 %v1829_v4  ;;  %1688 = vmatprep.subr.bf16.mxu1 %v1829_v4 }
 0x2f9   : > { %1663 = vmatpush3.bf16.msra.mxu0 %v1829_v4  ;;  %1696 = vmatpush3.bf16.msra.mxu1 %v1829_v4 }
 0x2fa   : > { %1664 = vmatprep.subr.bf16.mxu0 %v1830_v5  ;;  %1689 = vmatprep.subr.bf16.mxu1 %v1830_v5 }
 0x2fd   : > { %1665 = vmatpush3.bf16.msra.mxu0 %v1830_v5  ;;  %1697 = vmatpush3.bf16.msra.mxu1 %v1830_v5  ;;  %v1027_v5 = vadd.f32 %v2432_v13, %v1004_v59 }
 0x300   : > { %1667 = vmatmul.mubr.bf16.vlgmr.msra.gmra.mrb[0].mxu0 %v1833_v6  ;;  %1675 = vmatmul.mubr.bf16.vlgmr.msra.gmra.mrb[0].mxu1 %v1834_v7  ;;  %v1035_v6 = vadd.f32 %v2432_v13, %v1012_v60 }
 0x301   : > { %1670 = vmatprep.mubr.bf16.mxu0 %v1835_v8  ;;  %1678 = vmatprep.mubr.bf16.mxu1 %v1836_v9 }
 0x308   : > { %1671 = vmatmul.mubr.bf16.gmra.mrb[4].mxu0 %v1837_v10  ;;  %1679 = vmatmul.mubr.bf16.gmra.mrb[4].mxu1 %v1838_v11 }
 0x3d3   : > { %v1668_v27 = vpop.f32.mrb[0].mxu0  ;;  %v1676_v28 = vpop.f32.mrb[0].mxu1 }
 0x3d4   : > { %v1265_v31 = vadd.f32 %v1668_v27, %v1024_v19  ;;  %v1273_v32 = vadd.f32 %v1676_v28, %v1032_v20  ;;  %v1200_v33 = vpop.f32.mrb[1].mxu0  ;;  %v1232_v34 = vpop.f32.mrb[1].mxu1 }
 0x3d5   : > { %v1263_v35 = vadd.f32 %v1200_v33, %v1022_v23  ;;  %v1271_v36 = vadd.f32 %v1232_v34, %v1030_v24  ;;  %v1669_v37 = vpop.f32.mrb[2].mxu0  ;;  %v1677_v38 = vpop.f32.mrb[2].mxu1 }
 0x3d6   : > { %v1281_v41 = vmax.f32 %v1265_v31, 0.0  ;;  %v1289_v42 = vmax.f32 %v1273_v32, 0.0  ;;  %v1266_v43 = vadd.f32 %v1669_v37, %v1025_v25  ;;  %v1274_v44 = vadd.f32 %v1677_v38, %v1033_v26  ;;  %v1203_v45 = vpop.f32.mrb[3].mxu0  ;;  %v1235_v46 = vpop.f32.mrb[3].mxu1 }
 0x3d7   : > { %v1279_v49 = vmax.f32 %v1263_v35, 0.0  ;;  %v1287_v50 = vmax.f32 %v1271_v36, 0.0  ;;  %v1264_v51 = vadd.f32 %v1203_v45, %v1023_v29  ;;  %v1272_v52 = vadd.f32 %v1235_v46, %v1031_v30 }
 0x3d8   : > { %1297 = vst [vmem:[#allocation14 + $0x10] sm:$0xff] %v1281_v41  ;;  %1305 = vst [vmem:[#allocation14 + $0x50] sm:$0xff] %v1289_v42  ;;  %v1282_v55 = vmax.f32 %v1266_v43, 0.0  ;;  %v1290_v56 = vmax.f32 %v1274_v44, 0.0 }
 0x3d9   : > { %1295 = vst [vmem:[#allocation14] sm:$0xff] %v1279_v49  ;;  %1303 = vst [vmem:[#allocation14 + $0x40] sm:$0xff] %v1287_v50  ;;  %v1280_v61 = vmax.f32 %v1264_v51, 0.0  ;;  %v1288_v62 = vmax.f32 %v1272_v52, 0.0 }
 0x3da   : > { %1298 = vst [vmem:[#allocation14 + $0x18] sm:$0xff] %v1282_v55  ;;  %1306 = vst [vmem:[#allocation14 + $0x58] sm:$0xff] %v1290_v56 }
 0x3db   : > { %1296 = vst [vmem:[#allocation14 + $0x8] sm:$0xff] %v1280_v61  ;;  %1304 = vst [vmem:[#allocation14 + $0x48] sm:$0xff] %v1288_v62  ;;  %v1672_v3 = vpop.f32.mrb[4].mxu0  ;;  %v1680_v4 = vpop.f32.mrb[4].mxu1 }
 0x3dc   : > { %v1269_v7 = vadd.f32 %v1672_v3, %v1028_v57  ;;  %v1277_v8 = vadd.f32 %v1680_v4, %v1036_v58  ;;  %v1216_v9 = vpop.f32.mrb[5].mxu0  ;;  %v1248_v10 = vpop.f32.mrb[5].mxu1 }
 0x3dd   : > { %v1267_v11 = vadd.f32 %v1216_v9, %v1026_v63  ;;  %v1275_v12 = vadd.f32 %v1248_v10, %v1034_v0  ;;  %v1673_v14 = vpop.f32.mrb[6].mxu0  ;;  %v1681_v15 = vpop.f32.mrb[6].mxu1 }
 0x3de   : > { %v1285_v16 = vmax.f32 %v1269_v7, 0.0  ;;  %v1293_v17 = vmax.f32 %v1277_v8, 0.0  ;;  %v1270_v18 = vadd.f32 %v1673_v14, %v1029_v1  ;;  %v1278_v19 = vadd.f32 %v1681_v15, %v1037_v2  ;;  %v1219_v20 = vpop.f32.mrb[7].mxu0  ;;  %v1251_v21 = vpop.f32.mrb[7].mxu1 }
 0x3df   : > { %v1283_v22 = vmax.f32 %v1267_v11, 0.0  ;;  %v1291_v23 = vmax.f32 %v1275_v12, 0.0  ;;  %v1268_v24 = vadd.f32 %v1219_v20, %v1027_v5  ;;  %v1276_v25 = vadd.f32 %v1251_v21, %v1035_v6 }
 0x3e0   : > { %1301 = vst [vmem:[#allocation14 + $0x30] sm:$0xff] %v1285_v16  ;;  %1309 = vst [vmem:[#allocation14 + $0x70] sm:$0xff] %v1293_v17  ;;  %v1286_v13 = vmax.f32 %v1270_v18, 0.0  ;;  %v1294_v26 = vmax.f32 %v1278_v19, 0.0 }
 0x3e1   : > { %1299 = vst [vmem:[#allocation14 + $0x20] sm:$0xff] %v1283_v22  ;;  %1307 = vst [vmem:[#allocation14 + $0x60] sm:$0xff] %v1291_v23  ;;  %v1284_v27 = vmax.f32 %v1268_v24, 0.0  ;;  %v1292_v28 = vmax.f32 %v1276_v25, 0.0 }
 0x3e2   : > { %1302 = vst [vmem:[#allocation14 + $0x38] sm:$0xff] %v1286_v13  ;;  %1310 = vst [vmem:[#allocation14 + $0x78] sm:$0xff] %v1294_v26 }
 0x3e3   : > { %1300 = vst [vmem:[#allocation14 + $0x28] sm:$0xff] %v1284_v27  ;;  %1308 = vst [vmem:[#allocation14 + $0x68] sm:$0xff] %v1292_v28 }
 0x3e4 PF: > { %s2528_s24 = sadd.s32 4294967295, %s2065_s23   ;;  %s2077_s13 = smov [#allocation14]  }
 0x3e5   : > { %p2452_p11 = scmp.eq.s32.totalorder %s2528_s24, 3  ;;  %s1320_s4 = sshll.u32 %s2077_s13, 4  ;;  %s1321_s4 = int_to_ptr.vmem [resolvable:$true] %s1320_s4 }
 0x3e6   : > { %s1975_s5 = scalar_lea.vmem %s1321_s4, 2048  ;;  %p1982_p12 = scmp.lt.s32.totalorder %s1321_s4, %s1321_s4 }
 0x3e7   : > { %p1976_p0 = scmp.ne.s32.totalorder %s1321_s4, %s1975_s5  ;;  %p1983_p13 = scmp.lt.s32.totalorder %s1975_s5, %s1975_s5 }
 0x3e9   : > { %p1977_p2 = pnand %p1976_p0, %p2452_p11  ;;  %p1984_p4 = por %p1983_p13, %p1982_p12 }
 0x3eb   : > { %p1978_p9 = pneg %p1977_p2 }
 0x3ed   : > { %p1985_p5 = pnand %p1984_p4, %p1978_p9 }
 0x3ef   : > { %1988 = shalt.err (!%p1985_p5)
}
 0x3f0   : > { %s1989_s16 = scalar_lea.hbm %s2503_s8, 2048 }
 0x3f1   : > { %p1990_p3 = scmp.ne.s32.totalorder %s2503_s8, %s1989_s16  ;;  %p1995_p1 = scmp.lt.u32.totalorder %s1989_s16, %s2503_s8 }
 0x3f3   : > { %p1991_p8 = pnand %p1990_p3, %p2452_p11 }
 0x3f5   : > { %p1992_p6 = pneg %p1991_p8 }
 0x3f7   : > { %p1997_p7 = pnand %p1995_p1, %p1992_p6 }
 0x3f9   : > { %2000 = shalt.err (!%p1997_p7)
}
 0x3fa   : > { %s2078_s25 = smov 128   ;;  %s2079_s30 = smov 8  }
 0x3fb   : > { %1717 = dma.vmem_to_hbm [thread:$0]  (%p2452_p11), %s1321_s4, 2048, %s2503_s8, [#allocation8], %s2078_s25, %s2078_s25, %s2079_s30  }
 0x3fc   : > { %2040 = dma.done.wait (%p2452_p11), [#allocation8], 2048  }
 0x3fd   : > { %2042 = vsyncadd (%p2452_p11), [#allocation8], 4294965248 }
 0x3fe PF: > { %s32_s23 = sadd.s32 1, %s2065_s23   ;;  %s2530_s0 = smov %s2049_s1 }
 0x3ff   : > { %p29_p10 = scmp.ge.s32.totalorder %s32_s23, 6   ;;  %s2531_s1 = smov %s2053_s20 }
 0x400   : > { %s2532_s20 = smov %s2316_s9  ;;  %s2533_s21 = smov %s2061_s22 }
 0x401   : > { %s2534_s22 = smov %s2536_s18  ;;  %31 = sbr.rel (!%p29_p10) target bundleno = 30 (0x1e), region = 111 }
 0x408   :  { %1336 = vsyncpa [#allocation7], 1 }
 0x409   :  { %1338 = vsyncpa [#allocation7 + $0x1], 1 }
 0x40a   :  { %1339 = vsyncpa [#allocation10], 1 }
 0x40b   :  { %1340 = vsyncpa [#allocation13], 1 }
 0x40c   :  { %1341 = vsyncpa [#allocation8], 1 }
 0x40d   :  { %1343 = vsyncpa [#allocation8 + $0x1], 1 }

</bundles_post_ra>
